<compile_context>
chip_gen: v6e
topology: v6e:2x2x1
jax: 0.10.0
libtpu: 0.0.40
codegen_flags: <defaults>
</compile_context>

<pallas_src>
import functools

import jax
import jax.numpy as jnp
from jax.experimental import pallas as pl
from jax.experimental.pallas import tpu as pltpu

# ---- model hyper-parameters (small, consistent with the module) -------------
EMBED_DIM = 32
NUM_HEADS = 4
HEAD_DIM = EMBED_DIM // NUM_HEADS
FF_DIM = 64
BATCH = 2
SEQ = 8
LN_EPS = 1e-5


def _layernorm(x, gamma, beta):
    mu = jnp.mean(x, axis=-1, keepdims=True)
    var = jnp.mean(jnp.square(x - mu), axis=-1, keepdims=True)
    return (x - mu) * jax.lax.rsqrt(var + LN_EPS) * gamma + beta


def encoder_block_kernel(x_ref, bias_ref, wqkv_ref, wo_ref, w1_ref, w2_ref,
                         vec_ref, out_ref, *, num_heads):
    d = wo_ref.shape[0]          # embed dim
    f = w1_ref.shape[1]          # feed-forward dim
    hd = d // num_heads          # head dim

    x = x_ref[...]               # (N, 3D): [q | k | v] along lanes, N = B*S
    vecs = vec_ref[...]          # (4, 3D): packed bias / LayerNorm vectors

    q_in = x[:, :d]              # residual branch (the original query)

    # ---- fused QKV projection: one matmul vs. block-diagonal weight --------
    proj = jnp.dot(x, wqkv_ref[...],
                   preferred_element_type=jnp.float32) + vecs[0:1, :]   # (N, 3D)
    qp = proj[:, 0:d]
    kp = proj[:, d:2 * d]
    vp = proj[:, 2 * d:3 * d]

    # ---- split heads onto a leading batch axis: (N, D) -> (H, N, HD) -------
    def split_heads(t):
        return jnp.stack(
            [t[:, h * hd:(h + 1) * hd] for h in range(num_heads)], axis=0)

    scale = 1.0 / (hd ** 0.5)
    qh = split_heads(qp) * scale         # (H, N, HD)
    kh = split_heads(kp)
    vh = split_heads(vp)

    # ---- head-batched attention over the whole batch at once ---------------
    # bias masks query/key pairs that belong to different batch elements.
    scores = jnp.einsum('hqd,hkd->hqk', qh, kh,
                        preferred_element_type=jnp.float32)              # (H, N, N)
    scores = scores + bias_ref[...]                                      # broadcast

    m = jnp.max(scores, axis=-1, keepdims=True)
    p = jnp.exp(scores - m)
    l = jnp.sum(p, axis=-1, keepdims=True)
    ctx = jnp.einsum('hqk,hkd->hqd', p, vh,
                     preferred_element_type=jnp.float32)                 # (H, N, HD)
    ctx = ctx * pl.reciprocal(l, approx=True)   # deferred softmax normalization

    # ---- merge heads back: (H, N, HD) -> (N, D), then output projection ----
    attn = jnp.concatenate([ctx[h] for h in range(num_heads)], axis=-1)
    attn = jnp.dot(attn, wo_ref[...],
                   preferred_element_type=jnp.float32) + vecs[1:2, 0:d]

    # ---- residual + LayerNorm 1 (dropout1 = identity) -----------------------
    x1 = _layernorm(attn + q_in, vecs[1:2, d:2 * d], vecs[1:2, 2 * d:3 * d])

    # ---- feed-forward: Linear -> ReLU -> Linear -----------------------------
    h1 = jnp.dot(x1, w1_ref[...],
                 preferred_element_type=jnp.float32) + vecs[2:3, 0:f]
    h1 = jnp.maximum(h1, 0.0)
    ff = jnp.dot(h1, w2_ref[...],
                 preferred_element_type=jnp.float32) + vecs[2:3, f:f + d]

    # ---- residual + LayerNorm 2 (dropout2 = identity), single slab store ----
    out_ref[...] = _layernorm(ff + x1, vecs[3:4, 0:d], vecs[3:4, d:2 * d])


@jax.jit
def encoder_block(q, k, v, params):
    (wq, bq, wk, bk, wv, bv, wo, bo,
     g1, be1, w1, b1, w2, b2, g2, be2) = params
    B, S, D = q.shape
    N = B * S
    F = w1.shape[1]
    assert F + D <= 3 * D, "bias-slab packing assumes feedforward_dim <= 2*embed_dim"

    # ---- one-time parameter packing (plain XLA ops, outside the kernel) ----
    zero = jnp.zeros((D, D), jnp.float32)
    w_qkv = jnp.concatenate([
        jnp.concatenate([wq, zero, zero], axis=1),
        jnp.concatenate([zero, wk, zero], axis=1),
        jnp.concatenate([zero, zero, wv], axis=1),
    ], axis=0)                                                    # (3D, 3D)

    def pad_row(r):
        return jnp.pad(r, ((0, 0), (0, 3 * D - r.shape[1])))

    vec_slab = jnp.concatenate([
        pad_row(jnp.concatenate([bq, bk, bv], axis=1)),           # row 0
        pad_row(jnp.concatenate([bo, g1, be1], axis=1)),          # row 1
        pad_row(jnp.concatenate([b1, b2], axis=1)),               # row 2
        pad_row(jnp.concatenate([g2, be2], axis=1)),              # row 3
    ], axis=0)                                                    # (4, 3D)

    # [q | k | v] concatenated along lanes, batch folded into rows.
    x_cat = jnp.concatenate(
        [q.reshape(N, D), k.reshape(N, D), v.reshape(N, D)], axis=1)   # (N, 3D)

    # Additive mask: a query may only attend keys of its own batch element.
    batch_ids = jnp.repeat(jnp.arange(B, dtype=jnp.int32), S)
    attn_bias = jnp.where(batch_ids[:, None] == batch_ids[None, :],
                          0.0, -1e30).astype(jnp.float32)         # (N, N)

    vmem = pl.BlockSpec(memory_space=pltpu.MemorySpace.VMEM)
    out_flat = pl.pallas_call(
        functools.partial(encoder_block_kernel, num_heads=NUM_HEADS),
        out_shape=jax.ShapeDtypeStruct((N, D), jnp.float32),
        in_specs=[vmem] * 7,
        out_specs=vmem,
    )(x_cat, attn_bias, w_qkv, wo, w1, w2, vec_slab)

    return out_flat.reshape(B, S, D)


def encoder_block_reference(q, k, v, params):
    """Pure-JAX reference mirroring the PyTorch module (eval mode)."""
    (wq, bq, wk, bk, wv, bv, wo, bo,
     g1, be1, w1, b1, w2, b2, g2, be2) = params
    B, S, D = q.shape
    H, HD = NUM_HEADS, D // NUM_HEADS
    hi = jax.lax.Precision.HIGHEST

    def lin(x, w, b):
        return jnp.einsum('bsd,de->bse', x, w, precision=hi) + b

    def ln(x, g, be):
        mu = jnp.mean(x, axis=-1, keepdims=True)
        var = jnp.mean(jnp.square(x - mu), axis=-1, keepdims=True)
        return (x - mu) * jax.lax.rsqrt(var + LN_EPS) * g + be

    qp = lin(q, wq, bq).reshape(B, S, H, HD).transpose(0, 2, 1, 3)
    kp = lin(k, wk, bk).reshape(B, S, H, HD).transpose(0, 2, 1, 3)
    vp = lin(v, wv, bv).reshape(B, S, H, HD).transpose(0, 2, 1, 3)
    scores = jnp.einsum('bhqd,bhkd->bhqk', qp, kp, precision=hi) * (1.0 / HD ** 0.5)
    p = jax.nn.softmax(scores, axis=-1)
    ctx = jnp.einsum('bhqk,bhkd->bhqd', p, vp, precision=hi)
    ctx = ctx.transpose(0, 2, 1, 3).reshape(B, S, D)
    attn = lin(ctx, wo, bo)
    x1 = ln(attn + q, g1, be1)
    hmid = jnp.maximum(lin(x1, w1, b1), 0.0)
    ff = lin(hmid, w2, b2)
    return ln(ff + x1, g2, be2)


def init_params(key):
    ks = jax.random.split(key, 16)
    D, F = EMBED_DIM, FF_DIM
    f = jnp.float32

    def lin_w(k, din, dout):
        return jax.random.normal(k, (din, dout), f) * (1.0 / jnp.sqrt(din))

    def vec(k, dim, scale=0.02):
        return jax.random.normal(k, (1, dim), f) * scale

    wq = lin_w(ks[0], D, D); bq = vec(ks[1], D)
    wk = lin_w(ks[2], D, D); bk = vec(ks[3], D)
    wv = lin_w(ks[4], D, D); bv = vec(ks[5], D)
    wo = lin_w(ks[6], D, D); bo = vec(ks[7], D)
    g1 = 1.0 + vec(ks[8], D, 0.1); be1 = vec(ks[9], D)
    w1 = lin_w(ks[10], D, F); b1 = vec(ks[11], F)
    w2 = lin_w(ks[12], F, D); b2 = vec(ks[13], D)
    g2 = 1.0 + vec(ks[14], D, 0.1); be2 = vec(ks[15], D)

    return (wq, bq, wk, bk, wv, bv, wo, bo,
            g1, be1, w1, b1, w2, b2, g2, be2)


if __name__ == "__main__":
    key = jax.random.PRNGKey(0)
    kq, kk, kv, kparam = jax.random.split(key, 4)

    q = jax.random.normal(kq, (BATCH, SEQ, EMBED_DIM), jnp.float32)
    k = jax.random.normal(kk, (BATCH, SEQ, EMBED_DIM), jnp.float32)
    v = jax.random.normal(kv, (BATCH, SEQ, EMBED_DIM), jnp.float32)
    params = init_params(kparam)

    out = encoder_block(q, k, v, params)
    jax.block_until_ready(out)

    assert out.shape == (BATCH, SEQ, EMBED_DIM)
    assert bool(jnp.all(jnp.isfinite(out)))

    ref = encoder_block_reference(q, k, v, params)
    max_err = float(jnp.max(jnp.abs(out - ref)))
    assert max_err < 2e-2, f"kernel vs reference max abs error too large: {max_err}"

    print("KERNEL_OK")
</pallas_src>

<mosaic_0001>
module attributes {stable_mosaic.version = 11 : i64} {
  func.func @encoder_block_kernel(%arg0: memref<16x96xf32, #tpu.memory_space<vmem>>, %arg1: memref<16x16xf32, #tpu.memory_space<vmem>>, %arg2: memref<96x96xf32, #tpu.memory_space<vmem>>, %arg3: memref<32x32xf32, #tpu.memory_space<vmem>>, %arg4: memref<32x64xf32, #tpu.memory_space<vmem>>, %arg5: memref<64x32xf32, #tpu.memory_space<vmem>>, %arg6: memref<4x96xf32, #tpu.memory_space<vmem>>, %arg7: memref<16x32xf32, #tpu.memory_space<vmem>>) attributes {dimension_semantics = [], scalar_prefetch = 0 : i64, scratch_operands = 0 : i64, tpu.core_type = #tpu.core_type<tc>} {
    %c0 = arith.constant 0 : index
    %c0_0 = arith.constant 0 : index
    %0 = vector.load %arg0[%c0, %c0_0] : memref<16x96xf32, #tpu.memory_space<vmem>>, vector<16x96xf32>
    %c0_1 = arith.constant 0 : index
    %c0_2 = arith.constant 0 : index
    %1 = vector.load %arg6[%c0_1, %c0_2] : memref<4x96xf32, #tpu.memory_space<vmem>>, vector<4x96xf32>
    %2 = vector.extract_strided_slice %0 {offsets = [0, 0], sizes = [16, 32], strides = [1, 1]} : vector<16x96xf32> to vector<16x32xf32>
    %c0_3 = arith.constant 0 : index
    %c0_4 = arith.constant 0 : index
    %3 = vector.load %arg2[%c0_3, %c0_4] : memref<96x96xf32, #tpu.memory_space<vmem>>, vector<96x96xf32>
    %cst = arith.constant dense<0.000000e+00> : vector<16x96xf32>
    %4 = tpu.matmul %0, %3, %cst {dimension_numbers = #tpu.dot_dimension_numbers<[1], [0], [0], [1], [0, 0, 1, 1], [], []>} : vector<16x96xf32>, vector<96x96xf32>, vector<16x96xf32> -> vector<16x96xf32>
    %5 = vector.extract_strided_slice %1 {offsets = [0, 0], sizes = [1, 96], strides = [1, 1]} : vector<4x96xf32> to vector<1x96xf32>
    %6 = vector.broadcast %5 : vector<1x96xf32> to vector<16x96xf32>
    %7 = arith.addf %4, %6 : vector<16x96xf32>
    %8 = vector.extract_strided_slice %7 {offsets = [0, 0], sizes = [16, 32], strides = [1, 1]} : vector<16x96xf32> to vector<16x32xf32>
    %9 = vector.extract_strided_slice %7 {offsets = [0, 32], sizes = [16, 32], strides = [1, 1]} : vector<16x96xf32> to vector<16x32xf32>
    %10 = vector.extract_strided_slice %7 {offsets = [0, 64], sizes = [16, 32], strides = [1, 1]} : vector<16x96xf32> to vector<16x32xf32>
    %11 = vector.extract_strided_slice %8 {offsets = [0, 0], sizes = [16, 8], strides = [1, 1]} : vector<16x32xf32> to vector<16x8xf32>
    %12 = vector.extract_strided_slice %8 {offsets = [0, 8], sizes = [16, 8], strides = [1, 1]} : vector<16x32xf32> to vector<16x8xf32>
    %13 = vector.extract_strided_slice %8 {offsets = [0, 16], sizes = [16, 8], strides = [1, 1]} : vector<16x32xf32> to vector<16x8xf32>
    %14 = vector.extract_strided_slice %8 {offsets = [0, 24], sizes = [16, 8], strides = [1, 1]} : vector<16x32xf32> to vector<16x8xf32>
    %15 = vector.shape_cast %11 : vector<16x8xf32> to vector<1x16x8xf32>
    %16 = vector.shape_cast %12 : vector<16x8xf32> to vector<1x16x8xf32>
    %17 = vector.shape_cast %13 : vector<16x8xf32> to vector<1x16x8xf32>
    %18 = vector.shape_cast %14 : vector<16x8xf32> to vector<1x16x8xf32>
    %19 = tpu.concatenate %15, %16, %17, %18 in 0 : vector<1x16x8xf32>, vector<1x16x8xf32>, vector<1x16x8xf32>, vector<1x16x8xf32> -> vector<4x16x8xf32>
    %cst_5 = arith.constant 0.353553385 : f32
    %20 = vector.broadcast %cst_5 : f32 to vector<4x16x8xf32>
    %21 = arith.mulf %19, %20 : vector<4x16x8xf32>
    %22 = vector.extract_strided_slice %9 {offsets = [0, 0], sizes = [16, 8], strides = [1, 1]} : vector<16x32xf32> to vector<16x8xf32>
    %23 = vector.extract_strided_slice %9 {offsets = [0, 8], sizes = [16, 8], strides = [1, 1]} : vector<16x32xf32> to vector<16x8xf32>
    %24 = vector.extract_strided_slice %9 {offsets = [0, 16], sizes = [16, 8], strides = [1, 1]} : vector<16x32xf32> to vector<16x8xf32>
    %25 = vector.extract_strided_slice %9 {offsets = [0, 24], sizes = [16, 8], strides = [1, 1]} : vector<16x32xf32> to vector<16x8xf32>
    %26 = vector.shape_cast %22 : vector<16x8xf32> to vector<1x16x8xf32>
    %27 = vector.shape_cast %23 : vector<16x8xf32> to vector<1x16x8xf32>
    %28 = vector.shape_cast %24 : vector<16x8xf32> to vector<1x16x8xf32>
    %29 = vector.shape_cast %25 : vector<16x8xf32> to vector<1x16x8xf32>
    %30 = tpu.concatenate %26, %27, %28, %29 in 0 : vector<1x16x8xf32>, vector<1x16x8xf32>, vector<1x16x8xf32>, vector<1x16x8xf32> -> vector<4x16x8xf32>
    %31 = vector.extract_strided_slice %10 {offsets = [0, 0], sizes = [16, 8], strides = [1, 1]} : vector<16x32xf32> to vector<16x8xf32>
    %32 = vector.extract_strided_slice %10 {offsets = [0, 8], sizes = [16, 8], strides = [1, 1]} : vector<16x32xf32> to vector<16x8xf32>
    %33 = vector.extract_strided_slice %10 {offsets = [0, 16], sizes = [16, 8], strides = [1, 1]} : vector<16x32xf32> to vector<16x8xf32>
    %34 = vector.extract_strided_slice %10 {offsets = [0, 24], sizes = [16, 8], strides = [1, 1]} : vector<16x32xf32> to vector<16x8xf32>
    %35 = vector.shape_cast %31 : vector<16x8xf32> to vector<1x16x8xf32>
    %36 = vector.shape_cast %32 : vector<16x8xf32> to vector<1x16x8xf32>
    %37 = vector.shape_cast %33 : vector<16x8xf32> to vector<1x16x8xf32>
    %38 = vector.shape_cast %34 : vector<16x8xf32> to vector<1x16x8xf32>
    %39 = tpu.concatenate %35, %36, %37, %38 in 0 : vector<1x16x8xf32>, vector<1x16x8xf32>, vector<1x16x8xf32>, vector<1x16x8xf32> -> vector<4x16x8xf32>
    "tpu.trace_start"() <{level = 10 : i32, message = "hqd,hkd->hqk"}> : () -> ()
    %cst_6 = arith.constant dense<0.000000e+00> : vector<4x16x16xf32>
    %40 = tpu.matmul %21, %30, %cst_6 {dimension_numbers = #tpu.dot_dimension_numbers<[2], [2], [1], [1], [0, 0, 0, 1, 1, 1], [0], [0]>} : vector<4x16x8xf32>, vector<4x16x8xf32>, vector<4x16x16xf32> -> vector<4x16x16xf32>
    "tpu.trace_stop"() : () -> ()
    %c0_7 = arith.constant 0 : index
    %c0_8 = arith.constant 0 : index
    %41 = vector.load %arg1[%c0_7, %c0_8] : memref<16x16xf32, #tpu.memory_space<vmem>>, vector<16x16xf32>
    %42 = vector.shape_cast %41 : vector<16x16xf32> to vector<1x16x16xf32>
    %43 = vector.broadcast %42 : vector<1x16x16xf32> to vector<4x16x16xf32>
    %44 = arith.addf %40, %43 : vector<4x16x16xf32>
    %cst_9 = arith.constant dense<0xFF800000> : vector<4x16xf32>
    %45 = vector.multi_reduction <maximumf>, %44, %cst_9 [2] : vector<4x16x16xf32> to vector<4x16xf32>
    %46 = vector.shape_cast %45 : vector<4x16xf32> to vector<4x16x1xf32>
    %47 = vector.broadcast %46 : vector<4x16x1xf32> to vector<4x16x16xf32>
    %48 = arith.subf %44, %47 : vector<4x16x16xf32>
    %49 = math.exp %48 : vector<4x16x16xf32>
    %cst_10 = arith.constant dense<0.000000e+00> : vector<4x16xf32>
    %50 = vector.multi_reduction <add>, %49, %cst_10 [2] : vector<4x16x16xf32> to vector<4x16xf32>
    %51 = vector.shape_cast %50 : vector<4x16xf32> to vector<4x16x1xf32>
    "tpu.trace_start"() <{level = 10 : i32, message = "hqk,hkd->hqd"}> : () -> ()
    %cst_11 = arith.constant dense<0.000000e+00> : vector<4x16x8xf32>
    %52 = tpu.matmul %49, %39, %cst_11 {dimension_numbers = #tpu.dot_dimension_numbers<[2], [1], [1], [2], [0, 0, 0, 1, 1, 2], [0], [0]>} : vector<4x16x16xf32>, vector<4x16x8xf32>, vector<4x16x8xf32> -> vector<4x16x8xf32>
    "tpu.trace_stop"() : () -> ()
    %53 = tpu.reciprocal %51 {approx = true} : vector<4x16x1xf32> -> vector<4x16x1xf32>
    %54 = vector.broadcast %53 : vector<4x16x1xf32> to vector<4x16x8xf32>
    %55 = arith.mulf %52, %54 : vector<4x16x8xf32>
    %56 = vector.extract_strided_slice %55 {offsets = [0, 0, 0], sizes = [1, 16, 8], strides = [1, 1, 1]} : vector<4x16x8xf32> to vector<1x16x8xf32>
    %57 = vector.shape_cast %56 : vector<1x16x8xf32> to vector<16x8xf32>
    %58 = vector.extract_strided_slice %55 {offsets = [1, 0, 0], sizes = [1, 16, 8], strides = [1, 1, 1]} : vector<4x16x8xf32> to vector<1x16x8xf32>
    %59 = vector.shape_cast %58 : vector<1x16x8xf32> to vector<16x8xf32>
    %60 = vector.extract_strided_slice %55 {offsets = [2, 0, 0], sizes = [1, 16, 8], strides = [1, 1, 1]} : vector<4x16x8xf32> to vector<1x16x8xf32>
    %61 = vector.shape_cast %60 : vector<1x16x8xf32> to vector<16x8xf32>
    %62 = vector.extract_strided_slice %55 {offsets = [3, 0, 0], sizes = [1, 16, 8], strides = [1, 1, 1]} : vector<4x16x8xf32> to vector<1x16x8xf32>
    %63 = vector.shape_cast %62 : vector<1x16x8xf32> to vector<16x8xf32>
    %64 = tpu.concatenate %57, %59, %61, %63 in 1 : vector<16x8xf32>, vector<16x8xf32>, vector<16x8xf32>, vector<16x8xf32> -> vector<16x32xf32>
    %c0_12 = arith.constant 0 : index
    %c0_13 = arith.constant 0 : index
    %65 = vector.load %arg3[%c0_12, %c0_13] : memref<32x32xf32, #tpu.memory_space<vmem>>, vector<32x32xf32>
    %cst_14 = arith.constant dense<0.000000e+00> : vector<16x32xf32>
    %66 = tpu.matmul %64, %65, %cst_14 {dimension_numbers = #tpu.dot_dimension_numbers<[1], [0], [0], [1], [0, 0, 1, 1], [], []>} : vector<16x32xf32>, vector<32x32xf32>, vector<16x32xf32> -> vector<16x32xf32>
    %67 = vector.extract_strided_slice %1 {offsets = [1, 0], sizes = [1, 32], strides = [1, 1]} : vector<4x96xf32> to vector<1x32xf32>
    %68 = vector.broadcast %67 : vector<1x32xf32> to vector<16x32xf32>
    %69 = arith.addf %66, %68 : vector<16x32xf32>
    %70 = arith.addf %69, %2 : vector<16x32xf32>
    %71 = vector.extract_strided_slice %1 {offsets = [1, 32], sizes = [1, 32], strides = [1, 1]} : vector<4x96xf32> to vector<1x32xf32>
    %72 = vector.extract_strided_slice %1 {offsets = [1, 64], sizes = [1, 32], strides = [1, 1]} : vector<4x96xf32> to vector<1x32xf32>
    %cst_15 = arith.constant dense<0.000000e+00> : vector<16xf32>
    %73 = vector.multi_reduction <add>, %70, %cst_15 [1] : vector<16x32xf32> to vector<16xf32>
    %74 = vector.shape_cast %73 : vector<16xf32> to vector<16x1xf32>
    %cst_16 = arith.constant 3.200000e+01 : f32
    %75 = vector.broadcast %cst_16 : f32 to vector<16x1xf32>
    %76 = arith.divf %74, %75 : vector<16x1xf32>
    %77 = vector.broadcast %76 : vector<16x1xf32> to vector<16x32xf32>
    %78 = arith.subf %70, %77 : vector<16x32xf32>
    %79 = arith.mulf %78, %78 : vector<16x32xf32>
    %cst_17 = arith.constant dense<0.000000e+00> : vector<16xf32>
    %80 = vector.multi_reduction <add>, %79, %cst_17 [1] : vector<16x32xf32> to vector<16xf32>
    %81 = vector.shape_cast %80 : vector<16xf32> to vector<16x1xf32>
    %cst_18 = arith.constant 3.200000e+01 : f32
    %82 = vector.broadcast %cst_18 : f32 to vector<16x1xf32>
    %83 = arith.divf %81, %82 : vector<16x1xf32>
    %84 = vector.broadcast %76 : vector<16x1xf32> to vector<16x32xf32>
    %85 = arith.subf %70, %84 : vector<16x32xf32>
    %cst_19 = arith.constant 9.99999974E-6 : f32
    %86 = vector.broadcast %cst_19 : f32 to vector<16x1xf32>
    %87 = arith.addf %83, %86 : vector<16x1xf32>
    %88 = math.rsqrt %87 : vector<16x1xf32>
    %89 = vector.broadcast %88 : vector<16x1xf32> to vector<16x32xf32>
    %90 = arith.mulf %85, %89 : vector<16x32xf32>
    %91 = vector.broadcast %71 : vector<1x32xf32> to vector<16x32xf32>
    %92 = arith.mulf %90, %91 : vector<16x32xf32>
    %93 = vector.broadcast %72 : vector<1x32xf32> to vector<16x32xf32>
    %94 = arith.addf %92, %93 : vector<16x32xf32>
    %c0_20 = arith.constant 0 : index
    %c0_21 = arith.constant 0 : index
    %95 = vector.load %arg4[%c0_20, %c0_21] : memref<32x64xf32, #tpu.memory_space<vmem>>, vector<32x64xf32>
    %cst_22 = arith.constant dense<0.000000e+00> : vector<16x64xf32>
    %96 = tpu.matmul %94, %95, %cst_22 {dimension_numbers = #tpu.dot_dimension_numbers<[1], [0], [0], [1], [0, 0, 1, 1], [], []>} : vector<16x32xf32>, vector<32x64xf32>, vector<16x64xf32> -> vector<16x64xf32>
    %97 = vector.extract_strided_slice %1 {offsets = [2, 0], sizes = [1, 64], strides = [1, 1]} : vector<4x96xf32> to vector<1x64xf32>
    %98 = vector.broadcast %97 : vector<1x64xf32> to vector<16x64xf32>
    %99 = arith.addf %96, %98 : vector<16x64xf32>
    %cst_23 = arith.constant 0.000000e+00 : f32
    %100 = vector.broadcast %cst_23 : f32 to vector<16x64xf32>
    %101 = arith.maximumf %99, %100 : vector<16x64xf32>
    %c0_24 = arith.constant 0 : index
    %c0_25 = arith.constant 0 : index
    %102 = vector.load %arg5[%c0_24, %c0_25] : memref<64x32xf32, #tpu.memory_space<vmem>>, vector<64x32xf32>
    %cst_26 = arith.constant dense<0.000000e+00> : vector<16x32xf32>
    %103 = tpu.matmul %101, %102, %cst_26 {dimension_numbers = #tpu.dot_dimension_numbers<[1], [0], [0], [1], [0, 0, 1, 1], [], []>} : vector<16x64xf32>, vector<64x32xf32>, vector<16x32xf32> -> vector<16x32xf32>
    %104 = vector.extract_strided_slice %1 {offsets = [2, 64], sizes = [1, 32], strides = [1, 1]} : vector<4x96xf32> to vector<1x32xf32>
    %105 = vector.broadcast %104 : vector<1x32xf32> to vector<16x32xf32>
    %106 = arith.addf %103, %105 : vector<16x32xf32>
    %107 = arith.addf %106, %94 : vector<16x32xf32>
    %108 = vector.extract_strided_slice %1 {offsets = [3, 0], sizes = [1, 32], strides = [1, 1]} : vector<4x96xf32> to vector<1x32xf32>
    %109 = vector.extract_strided_slice %1 {offsets = [3, 32], sizes = [1, 32], strides = [1, 1]} : vector<4x96xf32> to vector<1x32xf32>
    %cst_27 = arith.constant dense<0.000000e+00> : vector<16xf32>
    %110 = vector.multi_reduction <add>, %107, %cst_27 [1] : vector<16x32xf32> to vector<16xf32>
    %111 = vector.shape_cast %110 : vector<16xf32> to vector<16x1xf32>
    %cst_28 = arith.constant 3.200000e+01 : f32
    %112 = vector.broadcast %cst_28 : f32 to vector<16x1xf32>
    %113 = arith.divf %111, %112 : vector<16x1xf32>
    %114 = vector.broadcast %113 : vector<16x1xf32> to vector<16x32xf32>
    %115 = arith.subf %107, %114 : vector<16x32xf32>
    %116 = arith.mulf %115, %115 : vector<16x32xf32>
    %cst_29 = arith.constant dense<0.000000e+00> : vector<16xf32>
    %117 = vector.multi_reduction <add>, %116, %cst_29 [1] : vector<16x32xf32> to vector<16xf32>
    %118 = vector.shape_cast %117 : vector<16xf32> to vector<16x1xf32>
    %cst_30 = arith.constant 3.200000e+01 : f32
    %119 = vector.broadcast %cst_30 : f32 to vector<16x1xf32>
    %120 = arith.divf %118, %119 : vector<16x1xf32>
    %121 = vector.broadcast %113 : vector<16x1xf32> to vector<16x32xf32>
    %122 = arith.subf %107, %121 : vector<16x32xf32>
    %cst_31 = arith.constant 9.99999974E-6 : f32
    %123 = vector.broadcast %cst_31 : f32 to vector<16x1xf32>
    %124 = arith.addf %120, %123 : vector<16x1xf32>
    %125 = math.rsqrt %124 : vector<16x1xf32>
    %126 = vector.broadcast %125 : vector<16x1xf32> to vector<16x32xf32>
    %127 = arith.mulf %122, %126 : vector<16x32xf32>
    %128 = vector.broadcast %108 : vector<1x32xf32> to vector<16x32xf32>
    %129 = arith.mulf %127, %128 : vector<16x32xf32>
    %130 = vector.broadcast %109 : vector<1x32xf32> to vector<16x32xf32>
    %131 = arith.addf %129, %130 : vector<16x32xf32>
    %c0_32 = arith.constant 0 : index
    %c0_33 = arith.constant 0 : index
    %132 = vector.load %arg7[%c0_32, %c0_33] : memref<16x32xf32, #tpu.memory_space<vmem>>, vector<16x32xf32>
    tpu.vector_store %arg7[%c0_32, %c0_33], %131 {strides = array<i32>} : memref<16x32xf32, #tpu.memory_space<vmem>>, vector<16x32xf32>,
    return
  }
}

</mosaic_0001>

<bundles_post_ra>
// kernel: eq.8
= control target key start
LH: loop header
LB: loop body
LE: loop exit
PB: predicated region body
PF: predicated region fallthrough
CT: control target
= control target key end

     0   :  { %vm8_vm0 = vcmask 64512   ;;  %vm14_vm1 = vcmask 130112   ;;  %s42_s0 = inlined_call_operand.vmem [shape: s32[2,8], index: 0, kind: input, shape index: {}]   ;;  %s43_s1 = inlined_call_operand.vmem [shape: s32[16], index: 1, kind: output, shape index: {}]  }
   0x1   :  { %v5_v0 = vld [vmem:[%s42_s0] sm:$0x3]  ;;  %s25_s0 = smov 8  }
   0x2   :  { %6 = vst [vmem:[#allocation1] sm:$0x3] %v5_v0 }
   0x9   :  { %v11_v1 = vld [vmem:[#allocation1 + $0x1] sm:$0x1]   ;;  %v7_v2 = vld [vmem:[#allocation1] sm:$0x1]  }
   0xa   :  { %12 = vrot.lane.b32.xlu0 %v11_v1, %s25_s0  ;;  %9 = vst.msk [vmem:[#allocation0] sm:$0x1] %vm8_vm0, %v7_v2  }
  0x7c   :  { %v13_v3 = vpop.permute.xlu0 %12  }
  0x7d   :  { %15 = vst.msk [vmem:[#allocation0] sm:$0x1] %vm14_vm1, %v13_v3  }
  0x84   :  { %v20_v4 = vld [vmem:[#allocation0] sm:$0x1] }
  0x85   :  { %23 = vst [vmem:[%s43_s1] sm:$0x1] %v20_v4 }

// kernel: encoder_block.1
= control target key start
LH: loop header
LB: loop body
LE: loop exit
PB: predicated region body
PF: predicated region fallthrough
CT: control target
= control target key end

     0   :  { %vm46_vm0 = vcmask 785408   ;;  %s1929_s0 = inlined_call_operand.vmem [shape: f32[16,96], index: 0, kind: input, shape index: {}]   ;;  %s1930_s1 = inlined_call_operand.vmem [shape: f32[16,16], index: 1, kind: input, shape index: {}]   ;;  %s1931_s2 = inlined_call_operand.vmem [shape: f32[96,96], index: 2, kind: input, shape index: {}]   ;;  %s1932_s3 = inlined_call_operand.vmem [shape: f32[32,32], index: 3, kind: input, shape index: {}]   ;;  %s1933_s4 = inlined_call_operand.vmem [shape: f32[32,64], index: 4, kind: input, shape index: {}]   ;;  %s1934_s5 = inlined_call_operand.vmem [shape: f32[64,32], index: 5, kind: input, shape index: {}]   ;;  %s1935_s6 = inlined_call_operand.vmem [shape: f32[4,96], index: 6, kind: input, shape index: {}]   ;;  %s1936_s7 = inlined_call_operand.hbm [shape: f32[16,32], index: 7, kind: output, shape index: {}]  }
   0x1   :  { %v41_v0 = vld [vmem:[%s1931_s2 + $0x58] sm:$0xff]  ;;  %v40_v1 = vld [vmem:[%s1931_s2 + $0x50] sm:$0xff]  ;;  %v39_v2 = vld [vmem:[%s1931_s2 + $0x48] sm:$0xff] }
   0x2   :  { %1456 = vmatprep.subr.mxu0 %v41_v0  ;;  %v38_v3 = vld [vmem:[%s1931_s2 + $0x40] sm:$0xff] }
   0x3   :  { %1457 = vmatpush3.msra.mxu0 %v41_v0  ;;  %v1717_v4 = vld [vmem:[%s1929_s0] sm:$0xff] }
   0x4   :  { %1458 = vmatprep.subr.mxu0 %v40_v1  ;;  %1480 = vmatprep.mubr.msk.f32.mxu0 %vm46_vm0, %v1717_v4 }
   0x5   :  { %1459 = vmatpush3.msra.mxu0 %v40_v1 }
   0x6   :  { %1460 = vmatprep.subr.mxu0 %v39_v2 }
   0x7   :  { %12 = vsyncpa [#allocation3], 0  ;;  %1461 = vmatpush3.msra.mxu0 %v39_v2  ;;  %v37_v5 = vld [vmem:[%s1931_s2 + $0x38] sm:$0xff]  ;;  %v36_v6 = vld [vmem:[%s1931_s2 + $0x30] sm:$0xff]  ;;  %v42_v14 = vlaneseq  ;;  %vm162_vm1 = vcmask 64512   ;;  %s1654_s8 = smov 104  }
   0x8   :  { %1462 = vmatprep.subr.mxu0 %v38_v3  ;;  %v35_v7 = vld [vmem:[%s1931_s2 + $0x28] sm:$0xff]  ;;  %v34_v8 = vld [vmem:[%s1931_s2 + $0x20] sm:$0xff]  ;;  %v33_v9 = vld [vmem:[%s1931_s2 + $0x18] sm:$0xff]  ;;  %s1656_s9 = smov 64   ;;  %vm515_vm2 = vcmask 130048   ;;  %s1657_s17 = smov 8  }
   0x9   :  { %1463 = vmatpush3.msra.mxu0 %v38_v3  ;;  %v32_v10 = vld [vmem:[%s1931_s2 + $0x10] sm:$0xff]  ;;  %v31_v11 = vld [vmem:[%s1931_s2 + $0x8] sm:$0xff]  ;;  %v30_v12 = vld [vmem:[%s1931_s2] sm:$0xff]  ;;  %v1752_v15 = vshrl.u32 %v42_v14, 7  ;;  %s1653_s2 = smov 120   ;;  %s1658_s22 = smov 16  }
   0xa   :  { %1464 = vmatprep.subr.mxu0 %v37_v5  ;;  %v1748_v13 = vld [vmem:[%s1929_s0 + $0x8] sm:$0xff]  ;;  %v1758_v17 = vld [vmem:[%s1935_s6] sm:$0xf]  ;;  %s1652_s0 = smov 112   ;;  %s1655_s6 = smov 96   ;;  %vm980_vm3 = vcmask 195584  }
   0xb   :  { %1465 = vmatpush3.msra.mxu0 %v37_v5  ;;  %v44_v16 = vsub.s32 0, %v1752_v15  ;;  %v157_v49 = vld [vmem:[%s1930_s1 + $0x8] sm:$0xff]  ;;  %v156_v51 = vld [vmem:[%s1930_s1] sm:$0xff]  ;;  %s1659_s23 = smov 24   ;;  %vm991_vm4 = vcmask 261120   ;;  %vm1216_vm5 = vcmask 523264  }
   0xc   :  { %1466 = vmatprep.subr.mxu0 %v36_v6 }
   0xd   :  { %1467 = vmatpush3.msra.mxu0 %v36_v6  ;;  %v45_v18 = vrot.slane %v1758_v17, %v44_v16 }
   0xe   :  { %1468 = vmatprep.subr.mxu0 %v35_v7 }
   0xf   :  { %1469 = vmatpush3.msra.mxu0 %v35_v7 }
  0x10   :  { %1470 = vmatprep.subr.mxu0 %v34_v8 }
  0x11   :  { %1471 = vmatpush3.msra.mxu0 %v34_v8 }
  0x12   :  { %1472 = vmatprep.subr.mxu0 %v33_v9 }
  0x13   :  { %1473 = vmatpush3.msra.mxu0 %v33_v9 }
  0x14   :  { %1474 = vmatprep.subr.mxu0 %v32_v10 }
  0x15   :  { %1475 = vmatpush3.msra.mxu0 %v32_v10 }
  0x16   :  { %1476 = vmatprep.subr.mxu0 %v31_v11 }
  0x17   :  { %1477 = vmatpush3.msra.mxu0 %v31_v11 }
  0x18   :  { %1478 = vmatprep.subr.mxu0 %v30_v12 }
  0x19   :  { %1479 = vmatpush3.msra.mxu0 %v30_v12 }
  0x1a   :  { %1481 = vmatmul.mubr.msk.f32.vlgmr.msra.gmra.mxu0 %vm46_vm0, %v1748_v13 }
  0xda   :  { %v1482_v19 = vpop.f32.mrf.mxu0 }
  0xdb   :  { %v125_v20 = vadd.f32 %v1482_v19, %v45_v18 }
  0xdc   :  { %v119_v21 = vpop.f32.mrf.mxu0 }
  0xdd   :  { %v120_v22 = vadd.f32 %v119_v21, %v45_v18  ;;  %138 = vrot.lane.b32.xlu1 %v125_v20, %s1652_s0  ;;  %132 = vrot.lane.b32.xlu0 %v125_v20, %s1653_s2  ;;  %v149_v32 = vmul.f32 0.35355338, %v125_v20 }
  0xdf   :  { %v148_v23 = vmul.f32 0.35355338, %v120_v22 }
  0xe1   :  { %136 = vrot.lane.b32.xlu1 %v120_v22, %s1652_s0  ;;  %130 = vrot.lane.b32.xlu0 %v120_v22, %s1653_s2 }
  0xe2   :  { %1487 = vmatprep.mubr.msk.f32.mxu1 %vm162_vm1, %v148_v23 }
  0xe5   :  { %142 = vrot.lane.b32.xlu1 %v120_v22, %s1654_s8  ;;  %144 = vrot.lane.b32.xlu0 %v125_v20, %s1654_s8 }
  0xe9   :  { %158 = vrot.lane.b32.xlu1 %v120_v22, %s1655_s6  ;;  %160 = vrot.lane.b32.xlu0 %v125_v20, %s1655_s6 }
 0x14f   :  { %v139_v24 = vpop.permute.xlu1 %138  ;;  %v133_v25 = vpop.permute.xlu0 %132 }
 0x150   :  { %250 = vrot.lane.b32.xlu0 %v133_v25, %s1655_s6  ;;  %v151_v37 = vmul.f32 0.35355338, %v133_v25  ;;  %v153_v42 = vmul.f32 0.35355338, %v139_v24 }
 0x153   :  { %v1765_v26 = vpop.permute.xlu1 %136  ;;  %v131_v27 = vpop.permute.xlu0 %130 }
 0x154   :  { %339 = vrot.lane.b32.xlu0 %v139_v24, %s1655_s6  ;;  %248 = vrot.lane.b32.xlu1 %v131_v27, %s1655_s6  ;;  %v150_v33 = vmul.f32 0.35355338, %v131_v27  ;;  %v152_v38 = vmul.f32 0.35355338, %v1765_v26 }
 0x157   :  { %v145_v28 = vpop.permute.xlu0 %144  ;;  %v1769_v29 = vpop.permute.xlu1 %142 }
 0x158   :  { %337 = vrot.lane.b32.xlu1 %v1765_v26, %s1655_s6  ;;  %428 = vrot.lane.b32.xlu0 %v145_v28, %s1655_s6  ;;  %v154_v43 = vmul.f32 0.35355338, %v1769_v29  ;;  %v155_v47 = vmul.f32 0.35355338, %v145_v28 }
 0x15b   :  { %v161_v30 = vpop.permute.xlu0 %160  ;;  %v159_v31 = vpop.permute.xlu1 %158 }
 0x15c   :  { %426 = vrot.lane.b32.xlu1 %v1769_v29, %s1655_s6  ;;  %588 = vrot.lane.b32.xlu0 %v120_v22, %s1656_s9 }
 0x15d   :  { %1483 = vmatprep.subr.msk.mxu1 %vm162_vm1, %v161_v30 }
 0x15e   :  { %1484 = vmatpush3.xpose.msk.msra.mxu1 %vm162_vm1, %v161_v30 }
 0x15f   :  { %1485 = vmatprep.subr.msk.mxu1 %vm162_vm1, %v159_v31 }
 0x160   :  { %590 = vrot.lane.b32.xlu1 %v125_v20, %s1656_s9  ;;  %764 = vrot.lane.b32.xlu0 %v139_v24, %s1656_s9 }
 0x162   :  { %1486 = vmatpush3.xpose.msk.msra.mxu1 %vm162_vm1, %v159_v31 }
 0x164   :  { %677 = vrot.lane.b32.xlu1 %v133_v25, %s1656_s9 }
 0x165   :  { %1488 = vmatmul.mubr.msk.f32.vlgmr.msra.gmra.mxu1 %vm162_vm1, %v149_v32 }
 0x166   :  { %1494 = vmatprep.mubr.msk.f32.mxu1 %vm162_vm1, %v150_v33 }
 0x168   :  { %851 = vrot.lane.b32.xlu1 %v145_v28, %s1656_s9 }
 0x16c   :  { %675 = vrot.lane.b32.xlu1 %v131_v27, %s1656_s9 }
 0x1c2   :  { %v251_v34 = vpop.permute.xlu0 %250 }
 0x1c3   :  { %1490 = vmatprep.subr.msk.mxu1 %vm162_vm1, %v251_v34 }
 0x1c4   :  { %1491 = vmatpush3.xpose.msk.msra.mxu1 %vm162_vm1, %v251_v34 }
 0x1c6   :  { %v249_v35 = vpop.permute.xlu1 %248  ;;  %v340_v36 = vpop.permute.xlu0 %339 }
 0x1c7   :  { %1492 = vmatprep.subr.msk.mxu1 %vm162_vm1, %v249_v35 }
 0x1c8   :  { %1493 = vmatpush3.xpose.msk.msra.mxu1 %vm162_vm1, %v249_v35 }
 0x1c9   :  { %1497 = vmatprep.subr.msk.mxu1 %vm162_vm1, %v340_v36 }
 0x1ca   :  { %v429_v39 = vpop.permute.xlu0 %428  ;;  %v338_v40 = vpop.permute.xlu1 %337 }
 0x1cb   :  { %1495 = vmatmul.mubr.msk.f32.vlgmr.msra.gmra.mxu1 %vm162_vm1, %v151_v37 }
 0x1cc   :  { %1498 = vmatpush3.xpose.msk.msra.mxu1 %vm162_vm1, %v340_v36  ;;  %1501 = vmatprep.mubr.msk.f32.mxu1 %vm162_vm1, %v152_v38 }
 0x1cd   :  { %1499 = vmatprep.subr.msk.mxu1 %vm162_vm1, %v338_v40 }
 0x1ce   :  { %v589_v41 = vpop.permute.xlu0 %588  ;;  %v427_v44 = vpop.permute.xlu1 %426 }
 0x1d0   :  { %1500 = vmatpush3.xpose.msk.msra.mxu1 %vm162_vm1, %v338_v40 }
 0x1d1   :  { %1504 = vmatprep.subr.msk.mxu1 %vm162_vm1, %v429_v39 }
 0x1d2   :  { %v765_v45 = vpop.permute.xlu0 %764  ;;  %v591_v46 = vpop.permute.xlu1 %590 }
 0x1d3   :  { %1502 = vmatmul.mubr.msk.f32.vlgmr.msra.gmra.mxu1 %vm162_vm1, %v153_v42  ;;  %1525 = vmatprep.subr.mxu0 %v765_v45 }
 0x1d4   :  { %1505 = vmatpush3.xpose.msk.msra.mxu1 %vm162_vm1, %v429_v39  ;;  %1508 = vmatprep.mubr.msk.f32.mxu1 %vm162_vm1, %v154_v43 }
 0x1d5   :  { %1526 = vmatpush3.msra.mxu0 %v765_v45  ;;  %1506 = vmatprep.subr.msk.mxu1 %vm162_vm1, %v427_v44 }
 0x1d6   :  { %v678_v48 = vpop.permute.xlu1 %677 }
 0x1d8   :  { %1507 = vmatpush3.xpose.msk.msra.mxu1 %vm162_vm1, %v427_v44 }
 0x1d9   :  { %1511 = vmatprep.subr.mxu1 %v591_v46 }
 0x1da   :  { %v852_v12 = vpop.permute.xlu1 %851 }
 0x1db   :  { %1509 = vmatmul.mubr.msk.f32.vlgmr.msra.gmra.mxu1 %vm162_vm1, %v155_v47 }
 0x1dc   :  { %1512 = vmatpush3.msra.mxu1 %v591_v46 }
 0x1dd   :  { %1513 = vmatprep.subr.mxu1 %v589_v41 }
 0x1de   :  { %1514 = vmatpush3.msra.mxu1 %v589_v41  ;;  %v676_v14 = vpop.permute.xlu1 %675 }
 0x1df   :  { %1518 = vmatprep.subr.mxu1 %v678_v48 }
 0x225   :  { %v1489_v50 = vpop.f32.mrf.mxu1 }
 0x226   :  { %v245_v52 = vadd.f32 %v1489_v50, %v157_v49 }
 0x227   :  { %v239_v53 = vpop.f32.mrf.mxu1 }
 0x228   :  { %v240_v54 = vadd.f32 %v239_v53, %v156_v51  ;;  %v519_v55 = vsel %vm515_vm2, %v245_v52, -inf }
 0x229   :  { %520 = vmax.xlane.f32.xlu1 %v519_v55 }
 0x22a   :  { %v516_v56 = vsel %vm515_vm2, %v240_v54, -inf }
 0x22b   :  { %517 = vmax.xlane.f32.xlu0 %v516_v56 }
 0x28b   :  { %v1496_v57 = vpop.f32.mrf.mxu1 }
 0x28c   :  { %v334_v58 = vadd.f32 %v1496_v57, %v157_v49 }
 0x28d   :  { %v328_v59 = vpop.f32.mrf.mxu1 }
 0x28e   :  { %v329_v60 = vadd.f32 %v328_v59, %v156_v51  ;;  %v525_v61 = vsel %vm515_vm2, %v334_v58, -inf }
 0x28f   :  { %526 = vmax.xlane.f32.xlu0 %v525_v61 }
 0x290   :  { %v522_v62 = vsel %vm515_vm2, %v329_v60, -inf }
 0x293   :  { %v1503_v63 = vpop.f32.mrf.mxu1  ;;  %523 = vmax.xlane.f32.xlu0 %v522_v62 }
 0x294   :  { %v423_v0 = vadd.f32 %v1503_v63, %v157_v49 }
 0x295   :  { %v417_v1 = vpop.f32.mrf.mxu1 }
 0x296   :  { %v418_v2 = vadd.f32 %v417_v1, %v156_v51  ;;  %v531_v3 = vsel %vm515_vm2, %v423_v0, -inf }
 0x297   :  { %532 = vmax.xlane.f32.xlu0 %v531_v3 }
 0x298   :  { %v528_v5 = vsel %vm515_vm2, %v418_v2, -inf }
 0x299   :  { %529 = vmax.xlane.f32.xlu1 %v528_v5 }
 0x29b   :  { %v1510_v6 = vpop.f32.mrf.mxu1 }
 0x29c   :  { %v512_v7 = vadd.f32 %v1510_v6, %v157_v49  ;;  %v986_v6 = vld [vmem:[%s1932_s3 + $0x18] sm:$0xff] }
 0x29d   :  { %v506_v8 = vpop.f32.mrf.mxu1 }
 0x29e   :  { %v507_v9 = vadd.f32 %v506_v8, %v156_v51  ;;  %v537_v10 = vsel %vm515_vm2, %v512_v7, -inf }
 0x29f   :  { %538 = vmax.xlane.f32.xlu0 %v537_v10 }
 0x2a0   :  { %v534_v11 = vsel %vm515_vm2, %v507_v9, -inf }
 0x2a1   :  { %535 = vmax.xlane.f32.xlu1 %v534_v11 }
 0x2b2   :  { %v521_v16 = vpop.xlane.xlu1 %520  ;;  %849 = vrot.lane.b32.xlu1 %v1769_v29, %s1656_s9 }
 0x2b3   :  { %v541_v18 = vsub.f32 %v245_v52, %v521_v16 }
 0x2b4   :  { %v518_v19 = vpop.xlane.xlu0 %517 }
 0x2b5   :  { %v540_v20 = vsub.f32 %v240_v54, %v518_v19  ;;  %762 = vrot.lane.b32.xlu0 %v1765_v26, %s1656_s9  ;;  %v550_v21 = vmul.f32 1.442695, %v541_v18  ;;  %v983_v18 = vld [vmem:[%s1932_s3] sm:$0xff] }
 0x2b7   :  { %v548_v22 = vmul.f32 1.442695, %v540_v20 }
 0x2b9   :  { %1590 = vpow2.f32 %v548_v22 }
 0x2ba   :  { %1592 = vpow2.f32 %v550_v21 }
 0x2c6   :  { %v1825_v23 = vpop.eup %1590 }
 0x2c7   :  { %v1593_v24 = vpop.eup %1592  ;;  %1515 = vmatprep.mubr.msk.f32.mxu1 %vm515_vm2, %v1825_v23 }
 0x2c8   :  { %1516 = vmatmul.mubr.msk.f32.vlgmr.msra.gmra.mxu1 %vm515_vm2, %v1593_v24  ;;  %v567_v57 = vsel %vm515_vm2, %v1593_v24, 0.0 }
 0x2c9   :  { %1519 = vmatpush3.msra.mxu1 %v678_v48 }
 0x2ca   :  { %1520 = vmatprep.subr.mxu1 %v676_v14 }
 0x2cb   :  { %1521 = vmatpush3.msra.mxu1 %v676_v14 }
 0x2cc   :  { %1532 = vmatprep.subr.mxu1 %v852_v12 }
 0x318   :  { %v527_v25 = vpop.xlane.xlu0 %526 }
 0x319   :  { %v543_v27 = vsub.f32 %v334_v58, %v527_v25  ;;  %v564_v58 = vsel %vm515_vm2, %v1825_v23, 0.0 }
 0x31b   :  { %v554_v28 = vmul.f32 1.442695, %v543_v27 }
 0x31c   :  { %v524_v26 = vpop.xlane.xlu0 %523 }
 0x31d   :  { %1594 = vpow2.f32 %v554_v28  ;;  %v542_v29 = vsub.f32 %v329_v60, %v524_v26 }
 0x31f   :  { %v552_v30 = vmul.f32 1.442695, %v542_v29 }
 0x320   :  { %v533_v31 = vpop.xlane.xlu0 %532 }
 0x321   :  { %1596 = vpow2.f32 %v552_v30  ;;  %v545_v32 = vsub.f32 %v423_v0, %v533_v31 }
 0x322   :  { %v530_v33 = vpop.xlane.xlu1 %529 }
 0x323   :  { %v558_v34 = vmul.f32 1.442695, %v545_v32  ;;  %v544_v35 = vsub.f32 %v418_v2, %v530_v33 }
 0x325   :  { %1598 = vpow2.f32 %v558_v34  ;;  %v556_v36 = vmul.f32 1.442695, %v544_v35 }
 0x327   :  { %1600 = vpow2.f32 %v556_v36 }
 0x328   :  { %v539_v37 = vpop.xlane.xlu0 %538 }
 0x329   :  { %v547_v38 = vsub.f32 %v512_v7, %v539_v37  ;;  %v985_v7 = vld [vmem:[%s1932_s3 + $0x10] sm:$0xff] }
 0x32a   :  { %v1595_v39 = vpop.eup %1594  ;;  %v536_v40 = vpop.xlane.xlu1 %535 }
 0x32b   :  { %v562_v41 = vmul.f32 1.442695, %v547_v38  ;;  %v546_v42 = vsub.f32 %v507_v9, %v536_v40  ;;  %v573_v43 = vsel %vm515_vm2, %v1595_v39, 0.0 }
 0x32c   :  { %574 = vadd.xlane.f32.xlu1 %v573_v43  ;;  %v763_v44 = vpop.permute.xlu0 %762 }
 0x32d   :  { %1602 = vpow2.f32 %v562_v41  ;;  %v560_v45 = vmul.f32 1.442695, %v546_v42  ;;  %1527 = vmatprep.subr.mxu0 %v763_v44 }
 0x32e   :  { %v1597_v46 = vpop.eup %1596  ;;  %1528 = vmatpush3.msra.mxu0 %v763_v44  ;;  %v850_v48 = vpop.permute.xlu1 %849 }
 0x32f   :  { %1604 = vpow2.f32 %v560_v45  ;;  %1522 = vmatprep.mubr.msk.f32.mxu1 %vm515_vm2, %v1597_v46  ;;  %v570_v47 = vsel %vm515_vm2, %v1597_v46, 0.0  ;;  %1539 = vmatprep.subr.mxu0 %v986_v6 }
 0x330   :  { %1523 = vmatmul.mubr.msk.f32.vlgmr.msra.gmra.mxu1 %vm515_vm2, %v1595_v39  ;;  %571 = vadd.xlane.f32.xlu0 %v570_v47  ;;  %v989_v47 = vsub.s32 1, %v1752_v15 }
 0x331   :  { %1533 = vmatpush3.msra.mxu1 %v852_v12  ;;  %v984_v12 = vld [vmem:[%s1932_s3 + $0x8] sm:$0xff] }
 0x332   :  { %v1599_v49 = vpop.eup %1598  ;;  %1534 = vmatprep.subr.mxu1 %v850_v48 }
 0x333   :  { %1535 = vmatpush3.msra.mxu1 %v850_v48  ;;  %v579_v50 = vsel %vm515_vm2, %v1599_v49, 0.0  ;;  %v990_v48 = vrot.slane %v1758_v17, %v989_v47 }
 0x334   :  { %v1601_v51 = vpop.eup %1600  ;;  %580 = vadd.xlane.f32.xlu0 %v579_v50 }
 0x335   :  { %1529 = vmatprep.mubr.msk.f32.mxu0 %vm515_vm2, %v1601_v51  ;;  %v576_v52 = vsel %vm515_vm2, %v1601_v51, 0.0 }
 0x336   :  { %1530 = vmatmul.mubr.msk.f32.vlgmr.msra.gmra.mxu0 %vm515_vm2, %v1599_v49 }
 0x337   :  { %1540 = vmatpush3.msra.mxu0 %v986_v6  ;;  %v1211_v6 = vld [vmem:[%s1934_s5 + $0x38] sm:$0xff] }
 0x338   :  { %577 = vadd.xlane.f32.xlu0 %v576_v52  ;;  %1541 = vmatprep.subr.mxu0 %v985_v7 }
 0x339   :  { %1542 = vmatpush3.msra.mxu0 %v985_v7  ;;  %v1210_v7 = vld [vmem:[%s1934_s5 + $0x30] sm:$0xff] }
 0x33a   :  { %v1603_v53 = vpop.eup %1602  ;;  %1543 = vmatprep.subr.mxu0 %v984_v12 }
 0x33b   :  { %v585_v54 = vsel %vm515_vm2, %v1603_v53, 0.0  ;;  %1544 = vmatpush3.msra.mxu0 %v984_v12 }
 0x33c   :  { %v1605_v55 = vpop.eup %1604  ;;  %586 = vadd.xlane.f32.xlu0 %v585_v54  ;;  %1545 = vmatprep.subr.mxu0 %v983_v18 }
 0x33d   :  { %1536 = vmatprep.mubr.msk.f32.mxu1 %vm515_vm2, %v1605_v55  ;;  %v582_v56 = vsel %vm515_vm2, %v1605_v55, 0.0  ;;  %1546 = vmatpush3.msra.mxu0 %v983_v18 }
 0x33e   :  { %583 = vadd.xlane.f32.xlu1 %v582_v56  ;;  %1537 = vmatmul.mubr.msk.f32.vlgmr.msra.gmra.mxu1 %vm515_vm2, %v1603_v53 }
 0x33f   :  { %1561 = vmatprep.subr.mxu0 %v1211_v6 }
 0x340   :  { %568 = vadd.xlane.f32.xlu0 %v567_v57 }
 0x342   :  { %565 = vadd.xlane.f32.xlu1 %v564_v58 }
 0x388   :  { %v1517_v63 = vpop.f32.mrf.mxu1 }
 0x38a   :  { %v666_v0 = vpop.f32.mrf.mxu1 }
 0x3b5   :  { %v575_v60 = vpop.xlane.xlu1 %574 }
 0x3b6   :  { %1606 = vrcp.f32 %v575_v60 }
 0x3b9   :  { %v572_v59 = vpop.xlane.xlu0 %571 }
 0x3ba   :  { %1608 = vrcp.f32 %v572_v59 }
 0x3bd   :  { %v581_v61 = vpop.xlane.xlu0 %580 }
 0x3be   :  { %1610 = vrcp.f32 %v581_v61 }
 0x3c1   :  { %v578_v62 = vpop.xlane.xlu0 %577 }
 0x3c2   :  { %1612 = vrcp.f32 %v578_v62 }
 0x3c3   :  { %v1607_v2 = vpop.eup %1606 }
 0x3c5   :  { %v587_v1 = vpop.xlane.xlu0 %586 }
 0x3c6   :  { %1614 = vrcp.f32 %v587_v1 }
 0x3c7   :  { %v584_v3 = vpop.xlane.xlu1 %583  ;;  %v1609_v9 = vpop.eup %1608 }
 0x3c8   :  { %1616 = vrcp.f32 %v584_v3  ;;  %v1114_v3 = vld [vmem:[%s1933_s4 + $0x8] sm:$0xff] }
 0x3c9   :  { %v569_v30 = vpop.xlane.xlu0 %568 }
 0x3cb   :  { %v1611_v14 = vpop.eup %1610  ;;  %v566_v29 = vpop.xlane.xlu1 %565 }
 0x3cc   :  { %1618 = vrcp.f32 %v566_v29 }
 0x3cd   :  { %1620 = vrcp.f32 %v569_v30 }
 0x3cf   :  { %v1613_v21 = vpop.eup %1612 }
 0x3d3   :  { %v1615_v23 = vpop.eup %1614 }
 0x3d5   :  { %v1617_v27 = vpop.eup %1616 }
 0x3d9   :  { %v1619_v33 = vpop.eup %1618 }
 0x3da   :  { %v1621_v35 = vpop.eup %1620  ;;  %v944_v37 = vmul.f32 %v1619_v33, %v666_v0  ;;  %v1205_v33 = vld [vmem:[%s1934_s5 + $0x8] sm:$0xff] }
 0x3db   :  { %v945_v38 = vmul.f32 %v1621_v35, %v1517_v63 }
 0x3f0   :  { %v1524_v5 = vpop.f32.mrf.mxu1 }
 0x3f1   :  { %v947_v8 = vmul.f32 %v1607_v2, %v1524_v5  ;;  %v1115_v2 = vld [vmem:[%s1933_s4 + $0x10] sm:$0xff]  ;;  %v1113_v5 = vld [vmem:[%s1933_s4] sm:$0xff] }
 0x3f2   :  { %v753_v10 = vpop.f32.mrf.mxu1 }
 0x3f3   :  { %v946_v11 = vmul.f32 %v1609_v9, %v753_v10  ;;  %956 = vrot.lane.b32.xlu0 %v947_v8, %s1657_s17  ;;  %v1119_v8 = vsub.s32 2, %v1752_v15  ;;  %v1209_v9 = vld [vmem:[%s1934_s5 + $0x28] sm:$0xff] }
 0x3f5   :  { %954 = vrot.lane.b32.xlu1 %v946_v11, %s1657_s17  ;;  %v1120_v10 = vrot.slane %v1758_v17, %v1119_v8  ;;  %v1208_v11 = vld [vmem:[%s1934_s5 + $0x20] sm:$0xff] }
 0x3f6   :  { %v1531_v16 = vpop.f32.mrf.mxu0 }
 0x3f7   :  { %v949_v19 = vmul.f32 %v1611_v14, %v1531_v16 }
 0x3f8   :  { %v840_v20 = vpop.f32.mrf.mxu0 }
 0x3f9   :  { %964 = vrot.lane.b32.xlu1 %v949_v19, %s1658_s22  ;;  %v948_v22 = vmul.f32 %v1613_v21, %v840_v20 }
 0x3fd   :  { %962 = vrot.lane.b32.xlu1 %v948_v22, %s1658_s22 }
 0x3fe   :  { %v1538_v24 = vpop.f32.mrf.mxu1 }
 0x3ff   :  { %v951_v25 = vmul.f32 %v1615_v23, %v1538_v24 }
 0x400   :  { %v927_v28 = vpop.f32.mrf.mxu1 }
 0x401   :  { %v950_v26 = vmul.f32 %v1617_v27, %v927_v28  ;;  %972 = vrot.lane.b32.xlu1 %v951_v25, %s1659_s23 }
 0x403   :  { %970 = vrot.lane.b32.xlu0 %v950_v26, %s1659_s23 }
 0x465   :  { %v957_v36 = vpop.permute.xlu0 %956 }
 0x466   :  { %v977_v41 = vsel %vm162_vm1, %v945_v38, %v957_v36 }
 0x467   :  { %v955_v31 = vpop.permute.xlu1 %954 }
 0x468   :  { %v976_v39 = vsel %vm162_vm1, %v944_v37, %v955_v31  ;;  %v1207_v31 = vld [vmem:[%s1934_s5 + $0x18] sm:$0xff] }
 0x46b   :  { %v965_v32 = vpop.permute.xlu1 %964 }
 0x46c   :  { %v979_v44 = vsel %vm515_vm2, %v977_v41, %v965_v32  ;;  %v1206_v32 = vld [vmem:[%s1934_s5 + $0x10] sm:$0xff] }
 0x46f   :  { %v963_v34 = vpop.permute.xlu1 %962 }
 0x470   :  { %v978_v42 = vsel %vm515_vm2, %v976_v39, %v963_v34  ;;  %v1204_v34 = vld [vmem:[%s1934_s5] sm:$0xff]  ;;  %s1660_s5 = smov [#allocation2]  }
 0x471   :  { %s1345_s21 = sshll.u32 %s1660_s5, 4  ;;  %s1346_s21 = int_to_ptr.vmem [resolvable:$true] %s1345_s21 }
 0x472   :  { %p1635_p1 = scmp.lt.s32.totalorder %s1346_s21, %s1346_s21 }
 0x473   :  { %v973_v40 = vpop.permute.xlu1 %972 }
 0x474   :  { %v982_v46 = vsel %vm980_vm3, %v979_v44, %v973_v40 }
 0x475   :  { %v971_v43 = vpop.permute.xlu0 %970 }
 0x476   :  { %v981_v45 = vsel %vm980_vm3, %v978_v42, %v971_v43 }
 0x477   :  { %1547 = vmatprep.mubr.msk.f32.mxu0 %vm991_vm4, %v981_v45 }
 0x478   :  { %1548 = vmatmul.mubr.msk.f32.vlgmr.msra.gmra.mxu0 %vm991_vm4, %v982_v46 }
 0x479   :  { %1562 = vmatpush3.msra.mxu0 %v1211_v6 }
 0x47a   :  { %1563 = vmatprep.subr.mxu0 %v1210_v7 }
 0x47b   :  { %1564 = vmatpush3.msra.mxu0 %v1210_v7 }
 0x47c   :  { %1565 = vmatprep.subr.mxu0 %v1209_v9 }
 0x47d   :  { %1566 = vmatpush3.msra.mxu0 %v1209_v9 }
 0x47e   :  { %1567 = vmatprep.subr.mxu0 %v1208_v11 }
 0x47f   :  { %1568 = vmatpush3.msra.mxu0 %v1208_v11 }
 0x480   :  { %1569 = vmatprep.subr.mxu0 %v1207_v31 }
 0x481   :  { %1570 = vmatpush3.msra.mxu0 %v1207_v31 }
 0x482   :  { %1571 = vmatprep.subr.mxu0 %v1206_v32 }
 0x483   :  { %1572 = vmatpush3.msra.mxu0 %v1206_v32 }
 0x484   :  { %1573 = vmatprep.subr.mxu0 %v1205_v33 }
 0x485   :  { %1574 = vmatpush3.msra.mxu0 %v1205_v33 }
 0x486   :  { %1575 = vmatprep.subr.mxu0 %v1204_v34 }
 0x487   :  { %1576 = vmatpush3.msra.mxu0 %v1204_v34 }
 0x538   :  { %v1549_v49 = vpop.f32.mrf.mxu0 }
 0x539   :  { %v1070_v50 = vadd.f32 %v1549_v49, %v990_v48 }
 0x53a   :  { %v1064_v51 = vpop.f32.mrf.mxu0 }
 0x53b   :  { %v1065_v52 = vadd.f32 %v1064_v51, %v990_v48  ;;  %v1074_v53 = vadd.f32 %v1070_v50, %v1748_v13 }
 0x53d   :  { %v1078_v54 = vsel %vm991_vm4, %v1074_v53, 0.0  ;;  %v1073_v55 = vadd.f32 %v1065_v52, %v1717_v4  ;;  %v1116_v4 = vld [vmem:[%s1933_s4 + $0x18] sm:$0xff] }
 0x53e   :  { %1079 = vadd.xlane.f32.xlu1 %v1078_v54  ;;  %1550 = vmatprep.subr.mxu1 %v1116_v4 }
 0x53f   :  { %v1075_v56 = vsel %vm991_vm4, %v1073_v55, 0.0  ;;  %1551 = vmatpush3.msra.mxu1 %v1116_v4 }
 0x540   :  { %1076 = vadd.xlane.f32.xlu0 %v1075_v56  ;;  %1552 = vmatprep.subr.mxu1 %v1115_v2 }
 0x541   :  { %1553 = vmatpush3.msra.mxu1 %v1115_v2 }
 0x542   :  { %1554 = vmatprep.subr.mxu1 %v1114_v3 }
 0x543   :  { %1555 = vmatpush3.msra.mxu1 %v1114_v3 }
 0x544   :  { %1556 = vmatprep.subr.mxu1 %v1113_v5 }
 0x545   :  { %1557 = vmatpush3.msra.mxu1 %v1113_v5 }
 0x54f   :  { %1103 = vrot.lane.b32.xlu1 %v990_v48, %s1655_s6 }
 0x553   :  { %1213 = vrot.lane.b32.xlu1 %v1120_v10, %s1656_s9 }
 0x5c7   :  { %v1080_v57 = vpop.xlane.xlu1 %1079 }
 0x5c8   :  { %v1083_v58 = vmul.f32 0.03125, %v1080_v57 }
 0x5c9   :  { %v1077_v59 = vpop.xlane.xlu0 %1076 }
 0x5ca   :  { %v1082_v60 = vmul.f32 0.03125, %v1077_v59  ;;  %v1085_v61 = vsub.f32 %v1074_v53, %v1083_v58 }
 0x5cb   :  { %v1104_v22 = vpop.permute.xlu1 %1103 }
 0x5cc   :  { %v1084_v62 = vsub.f32 %v1073_v55, %v1082_v60  ;;  %v1087_v13 = vmul.f32 %v1085_v61, %v1085_v61  ;;  %v1328_v60 = vsub.s32 3, %v1752_v15 }
 0x5ce   :  { %v1086_v63 = vmul.f32 %v1084_v62, %v1084_v62  ;;  %v1091_v1 = vsel %vm991_vm4, %v1087_v13, 0.0 }
 0x5cf   :  { %v1214_v41 = vpop.permute.xlu1 %1213 }
 0x5d0   :  { %v1088_v0 = vsel %vm991_vm4, %v1086_v63, 0.0 }
 0x5d1   :  { %1089 = vadd.xlane.f32.xlu0 %v1088_v0 }
 0x5d5   :  { %1092 = vadd.xlane.f32.xlu0 %v1091_v1 }
 0x5eb   :  { %1108 = vrot.lane.b32.xlu0 %v990_v48, %s1656_s9 }
 0x65a   :  { %v1090_v12 = vpop.xlane.xlu0 %1089 }
 0x65b   :  { %v1094_v14 = vmul.f32 0.03125, %v1090_v12 }
 0x65d   :  { %v1096_v16 = vadd.f32 1e-05, %v1094_v14 }
 0x65e   :  { %v1093_v18 = vpop.xlane.xlu0 %1092 }
 0x65f   :  { %1622 = vrsqrt.f32 %v1096_v16  ;;  %v1095_v19 = vmul.f32 0.03125, %v1093_v18 }
 0x661   :  { %v1097_v20 = vadd.f32 1e-05, %v1095_v19 }
 0x662   :  { %v1109_v24 = vpop.permute.xlu0 %1108 }
 0x663   :  { %1624 = vrsqrt.f32 %v1097_v20 }
 0x66c   :  { %v1623_v21 = vpop.eup %1622 }
 0x66d   :  { %v1100_v23 = vmul.f32 %v1623_v21, %v1084_v62 }
 0x66f   :  { %v1106_v25 = vmul.f32 %v1104_v22, %v1100_v23 }
 0x670   :  { %v1625_v27 = vpop.eup %1624 }
 0x671   :  { %v1101_v28 = vmul.f32 %v1625_v27, %v1085_v61  ;;  %v1111_v26 = vadd.f32 %v1109_v24, %v1106_v25  ;;  %v1329_v61 = vrot.slane %v1758_v17, %v1328_v60 }
 0x673   :  { %v1107_v29 = vmul.f32 %v1104_v22, %v1101_v28  ;;  %1558 = vmatprep.mubr.msk.f32.mxu1 %vm991_vm4, %v1111_v26 }
 0x675   :  { %v1112_v30 = vadd.f32 %v1109_v24, %v1107_v29 }
 0x677   :  { %1559 = vmatmul.mubr.msk.f32.vlgmr.msra.gmra.mxu1 %vm991_vm4, %v1112_v30 }
 0x737   :  { %v1560_v35 = vpop.f32.mrf.mxu1 }
 0x738   :  { %v1199_v36 = vadd.f32 %v1560_v35, %v1120_v10 }
 0x739   :  { %v1193_v37 = vpop.f32.mrf.mxu1 }
 0x73a   :  { %v1194_v38 = vadd.f32 %v1193_v37, %v1120_v10  ;;  %v1203_v40 = vmax.f32 %v1199_v36, 0.0 }
 0x73c   :  { %v1202_v39 = vmax.f32 %v1194_v38, 0.0 }
 0x73e   :  { %1577 = vmatprep.mubr.msk.f32.mxu0 %vm1216_vm5, %v1202_v39 }
 0x73f   :  { %1578 = vmatmul.mubr.msk.f32.vlgmr.msra.gmra.mxu0 %vm1216_vm5, %v1203_v40 }
 0x7ff   :  { %v1579_v42 = vpop.f32.mrf.mxu0 }
 0x800   :  { %v1295_v43 = vadd.f32 %v1579_v42, %v1214_v41 }
 0x801   :  { %v1289_v44 = vpop.f32.mrf.mxu0 }
 0x802   :  { %v1290_v45 = vadd.f32 %v1289_v44, %v1214_v41  ;;  %v1299_v46 = vadd.f32 %v1295_v43, %v1112_v30 }
 0x804   :  { %v1303_v47 = vsel %vm991_vm4, %v1299_v46, 0.0  ;;  %v1298_v48 = vadd.f32 %v1290_v45, %v1111_v26 }
 0x805   :  { %1304 = vadd.xlane.f32.xlu0 %v1303_v47 }
 0x806   :  { %v1300_v49 = vsel %vm991_vm4, %v1298_v48, 0.0 }
 0x807   :  { %1301 = vadd.xlane.f32.xlu1 %v1300_v49 }
 0x88e   :  { %v1305_v50 = vpop.xlane.xlu0 %1304 }
 0x88f   :  { %v1307_v51 = vmul.f32 0.03125, %v1305_v50 }
 0x890   :  { %v1302_v52 = vpop.xlane.xlu1 %1301 }
 0x891   :  { %v1309_v53 = vsub.f32 %v1299_v46, %v1307_v51  ;;  %v1306_v54 = vmul.f32 0.03125, %v1302_v52 }
 0x893   :  { %v1308_v55 = vsub.f32 %v1298_v48, %v1306_v54  ;;  %v1311_v56 = vmul.f32 %v1309_v53, %v1309_v53 }
 0x895   :  { %v1315_v57 = vsel %vm991_vm4, %v1311_v56, 0.0  ;;  %v1310_v58 = vmul.f32 %v1308_v55, %v1308_v55 }
 0x896   :  { %1316 = vadd.xlane.f32.xlu1 %v1315_v57 }
 0x897   :  { %v1312_v59 = vsel %vm991_vm4, %v1310_v58, 0.0 }
 0x898   :  { %1313 = vadd.xlane.f32.xlu0 %v1312_v59 }
 0x8ae   :  { %1333 = vrot.lane.b32.xlu0 %v1329_v61, %s1655_s6  ;;  %s1630_s6 = scalar_lea.vmem %s1346_s21, 256 }
 0x8af   :  { %p1631_p0 = scmp.ne.s32.totalorder %s1346_s21, %s1630_s6  ;;  %p1636_p2 = scmp.lt.s32.totalorder %s1630_s6, %s1630_s6 }
 0x8b1   :  { %p1637_p3 = por %p1636_p2, %p1635_p1 }
 0x8b3   :  { %p1638_p4 = pnand %p1637_p3, %p1631_p0 }
 0x91f   :  { %v1317_v62 = vpop.xlane.xlu1 %1316 }
 0x920   :  { %v1319_v63 = vmul.f32 0.03125, %v1317_v62 }
 0x921   :  { %v1314_v0 = vpop.xlane.xlu0 %1313 }
 0x922   :  { %v1321_v13 = vadd.f32 1e-05, %v1319_v63  ;;  %v1318_v1 = vmul.f32 0.03125, %v1314_v0 }
 0x924   :  { %1626 = vrsqrt.f32 %v1321_v13  ;;  %v1320_v4 = vadd.f32 1e-05, %v1318_v1 }
 0x925   :  { %v1334_v6 = vpop.permute.xlu0 %1333 }
 0x926   :  { %1628 = vrsqrt.f32 %v1320_v4 }
 0x931   :  { %v1627_v2 = vpop.eup %1626 }
 0x932   :  { %v1325_v3 = vmul.f32 %v1627_v2, %v1309_v53 }
 0x933   :  { %v1629_v5 = vpop.eup %1628 }
 0x934   :  { %v1324_v7 = vmul.f32 %v1629_v5, %v1308_v55  ;;  %v1331_v8 = vmul.f32 %v1329_v61, %v1325_v3 }
 0x936   :  { %v1330_v15 = vmul.f32 %v1329_v61, %v1324_v7  ;;  %v1337_v17 = vadd.f32 %v1334_v6, %v1331_v8 }
 0x938   :  { %v1336_v9 = vadd.f32 %v1334_v6, %v1330_v15  ;;  %1339 = vst.msk [vmem:[#allocation2 + $0x8] sm:$0xff] %vm991_vm4, %v1337_v17 }
 0x93a   :  { %1338 = vst.msk [vmem:[#allocation2] sm:$0xff] %vm991_vm4, %v1336_v9 }
 0x93b   :  { %1641 = shalt.err (!%p1638_p4)
}
 0x93c   :  { %s1661_s22 = smov 128  }
 0x93d   :  { %1351 = dma.vmem_to_hbm [thread:$0]  %s1346_s21, 256, %s1936_s7, [#allocation3], %s1661_s22, %s1661_s22, %s1657_s17  }
 0x93e   :  { %1650 = dma.done.wait [#allocation3], 256  }
 0x93f   :  { %1651 = vsyncadd [#allocation3], 4294967040 }
 0x940   :  { %1355 = vsyncpa [#allocation3], 1 }

</bundles_post_ra>
